<compile_context>
chip_gen: v7x
topology: tpu7x:2x2x1
jax: 0.10.0
libtpu: 0.0.40
codegen_flags: <defaults>
</compile_context>

<pallas_src>
import functools
import numpy as np

import jax
import jax.numpy as jnp
from jax import lax
from jax.experimental import pallas as pl
from jax.experimental.pallas import tpu as pltpu

NEG = -1e9          # single padding constant for all unused (padded) label lanes
LANE_LABELS = 16    # real label count (10) rounded up to a sublane multiple


# ----------------------------------------------------------------------------
# Kernel 1: hidden2label projection   (M, H) @ (H, LI) + b  -> (M, LI)
#   gridded over M (parallel), bf16 operands, f32 MXU accumulation
# ----------------------------------------------------------------------------
def _hidden2label_kernel(x_ref, w_ref, b_ref, o_ref):
    o_ref[...] = (
        jnp.dot(x_ref[...], w_ref[...], preferred_element_type=jnp.float32)
        + b_ref[...]
    )


def _pick_row_tile(m):
    for cand in (512, 256, 128, 64, 32, 16):
        if m % cand == 0:
            return cand
    return m  # fall back to the full extent (block == array dims)


def hidden2label(x, w_p, b_p):
    m, h = x.shape
    li = w_p.shape[1]
    tm = _pick_row_tile(m)
    return pl.pallas_call(
        _hidden2label_kernel,
        out_shape=jax.ShapeDtypeStruct((m, li), jnp.float32),
        grid_spec=pltpu.PrefetchScalarGridSpec(
            num_scalar_prefetch=0,
            grid=(m // tm,),
            in_specs=[
                pl.BlockSpec((tm, h), lambda i: (i, 0)),
                pl.BlockSpec((h, li), lambda i: (0, 0)),
                pl.BlockSpec((1, li), lambda i: (0, 0)),
            ],
            out_specs=pl.BlockSpec((tm, li), lambda i: (i, 0)),
        ),
        compiler_params=pltpu.CompilerParams(
            dimension_semantics=("parallel",)),
    )(x, w_p, b_p.reshape(1, li))


# ----------------------------------------------------------------------------
# Kernel 2: CRF Viterbi decode
#   feats: (T, B, LI) f32 time-major, transitions: (LI, LI) f32
#   outputs: score (B, 1) f32, path (T, B, 1) int32
# ----------------------------------------------------------------------------
def _viterbi_kernel(feats_ref, trans_ref, score_ref, path_ref, psi_ref, *,
                    start_label_id, num_labels, unroll):
    T, B, LI = feats_ref.shape
    trans = trans_ref[...]                                        # (LI, LI)
    lane = lax.broadcasted_iota(jnp.int32, (B, LI), 1)            # label index per lane
    idx3 = lax.broadcasted_iota(jnp.int32, (B, LI, LI), 2)
    big = jnp.int32(LI)

    # log_delta[:, 0, :]: real labels -10000 (exactly as in the PyTorch module),
    # start label 0, padded label lanes NEG.
    log_delta0 = jnp.where(
        lane == start_label_id, jnp.float32(0.0),
        jnp.where(lane < num_labels, jnp.float32(-10000.0), jnp.float32(NEG)))

    def fwd_body(t, log_delta):
        # scores[b, i, j] = transitions[i, j] + log_delta[b, j]
        scores = trans[None, :, :] + log_delta[:, None, :]        # (B, LI, LI)
        best = jnp.max(scores, axis=-1)                           # (B, LI)
        # first-occurrence argmax, reusing `best` (no second lane reduction of scores)
        psi_ref[t] = jnp.min(
            jnp.where(scores == best[:, :, None], idx3, big), axis=-1)
        return best + feats_ref[t]                                # (B, LI)

    log_delta = lax.fori_loop(1, T, fwd_body, log_delta0, unroll=unroll)

    m = jnp.max(log_delta, axis=-1, keepdims=True)                # (B, 1)
    score_ref[...] = m
    last = jnp.min(jnp.where(log_delta == m, lane, big), axis=-1)  # (B,) int32
    path_ref[T - 1] = last[:, None]

    def bwd_body(i, nxt):
        t = T - 2 - i
        # integer one-hot gather of psi[t+1][b, nxt[b]]
        prev = jnp.max(jnp.where(lane == nxt[:, None], psi_ref[t + 1], 0), axis=-1)
        path_ref[t] = prev[:, None]
        return prev

    lax.fori_loop(0, T - 1, bwd_body, last, unroll=unroll)


def viterbi_decode(feats_tbl, trans_p, start_label_id, num_labels):
    T, B, LI = feats_tbl.shape
    vmem = pl.BlockSpec(memory_space=pltpu.MemorySpace.VMEM)
    unroll = True if T <= 64 else 4
    kernel = functools.partial(_viterbi_kernel, start_label_id=start_label_id,
                               num_labels=num_labels, unroll=unroll)
    score, path_tb = pl.pallas_call(
        kernel,
        out_shape=(jax.ShapeDtypeStruct((B, 1), jnp.float32),
                   jax.ShapeDtypeStruct((T, B, 1), jnp.int32)),
        in_specs=[vmem, vmem],
        out_specs=(vmem, vmem),
        scratch_shapes=[pltpu.VMEM((T, B, LI), jnp.int32)],
    )(feats_tbl, trans_p)
    return score[:, 0], path_tb[:, :, 0].T   # (B,), (B, T)


# ----------------------------------------------------------------------------
# Synthetic BERT encoder (plain JAX glue, emits time-major hidden states) + forward
# ----------------------------------------------------------------------------
def synthetic_bert_encoder(params, input_ids, segment_ids, input_mask):
    """Deterministic stand-in for the pretrained BertModel; emits (T, B, H)."""
    ids_t = input_ids.T
    seg_t = segment_ids.T
    msk_t = input_mask.T
    T = ids_t.shape[0]
    h = (params["word_emb"][ids_t]
         + params["seg_emb"][seg_t]
         + params["pos_emb"][:T, None, :])
    mu = h.mean(-1, keepdims=True)
    var = ((h - mu) ** 2).mean(-1, keepdims=True)
    h = (h - mu) / jnp.sqrt(var + 1e-12)
    h = h * params["ln_gamma"] + params["ln_beta"]
    return h * msk_t[..., None].astype(h.dtype)


def bert_crf_ner_forward(params, input_ids, segment_ids, input_mask,
                         num_labels, start_label_id):
    B, T = input_ids.shape
    H = params["word_emb"].shape[1]
    LI = params["w_p"].shape[1]

    # Pad the batch to a sublane multiple so Viterbi (B, L) vregs are dense.
    B_pad = max(8, -(-B // 8) * 8)
    pad = B_pad - B
    if pad:
        input_ids = jnp.pad(input_ids, ((0, pad), (0, 0)))
        segment_ids = jnp.pad(segment_ids, ((0, pad), (0, 0)))
        input_mask = jnp.pad(input_mask, ((0, pad), (0, 0)))

    # Time-major hidden states (T, B_pad, H); dropout(0.2) == identity at inference.
    seq_out = synthetic_bert_encoder(params, input_ids, segment_ids, input_mask)

    x = seq_out.reshape(T * B_pad, H).astype(jnp.bfloat16)
    w_bf = params["w_p"].astype(jnp.bfloat16)
    feats = hidden2label(x, w_bf, params["b_p"])          # (T*B_pad, LI) f32, Pallas MXU kernel
    feats_tbl = feats.reshape(T, B_pad, LI)               # time-major, free reshape (no transpose)

    score, path = viterbi_decode(feats_tbl, params["trans_p"],
                                 start_label_id, num_labels)

    # Real-label features in the module's (B, T, L) convention (return / validation only).
    feats_real = feats_tbl[:, :B, :num_labels].transpose(1, 0, 2)
    return score[:B], path[:B], feats_real


# ----------------------------------------------------------------------------
# Pure-numpy reference of the PyTorch _viterbi_decode (for validation)
# ----------------------------------------------------------------------------
def reference_viterbi(feats, transitions, start_label_id):
    feats = np.asarray(feats, np.float32)
    tr = np.asarray(transitions, np.float32)
    B, T, L = feats.shape
    log_delta = np.full((B, L), -10000.0, np.float32)
    log_delta[:, start_label_id] = 0.0
    psi = np.zeros((B, T, L), np.int64)
    for t in range(1, T):
        scores = tr[None] + log_delta[:, None, :]
        psi[:, t] = scores.argmax(-1)
        log_delta = scores.max(-1) + feats[:, t]
    path = np.zeros((B, T), np.int64)
    score = log_delta.max(-1)
    path[:, -1] = log_delta.argmax(-1)
    for t in range(T - 2, -1, -1):
        path[:, t] = psi[np.arange(B), t + 1, path[:, t + 1]]
    return score, path


# ----------------------------------------------------------------------------
if __name__ == "__main__":
    # label set from CybersecurityNER_DataProcessor
    label_types = ['X', '[CLS]', '[SEP]', 'O', 'B-TARGET_ASSET', 'I-TARGET_ASSET',
                   'B-PRECON', 'I-PRECON', 'B-MITIGATION', 'I-MITIGATION']
    L = len(label_types)                          # 10
    LI = LANE_LABELS                              # 16 (sublane-padded label dim)
    start_label_id = label_types.index('[CLS]')   # 1
    stop_label_id = label_types.index('[SEP]')    # 2

    B, T, H, V = 2, 8, 768, 32                    # small batch/seq; hidden_size=768 as in the module

    key = jax.random.PRNGKey(0)
    k_w, k_t, k_we, k_se, k_pe, k_ids = jax.random.split(key, 6)

    # hidden2label: xavier_uniform weight (L, H), zero bias
    bound = float(np.sqrt(6.0 / (H + L)))
    W = jax.random.uniform(k_w, (L, H), jnp.float32, -bound, bound)
    b = jnp.zeros((L,), jnp.float32)

    # CRF transitions: randn, with start row / stop column clamped to -10000
    transitions = jax.random.normal(k_t, (L, L), jnp.float32)
    transitions = transitions.at[start_label_id, :].set(-10000.0)
    transitions = transitions.at[:, stop_label_id].set(-10000.0)

    params = {
        # label-padded projection + transitions (padded lanes poisoned with NEG)
        "w_p": jnp.zeros((H, LI), jnp.float32).at[:, :L].set(W.T),
        "b_p": jnp.full((LI,), NEG, jnp.float32).at[:L].set(b),
        "trans_p": jnp.full((LI, LI), NEG, jnp.float32).at[:L, :L].set(transitions),
        # synthetic encoder
        "word_emb": 0.02 * jax.random.normal(k_we, (V, H), jnp.float32),
        "seg_emb": 0.02 * jax.random.normal(k_se, (2, H), jnp.float32),
        "pos_emb": 0.02 * jax.random.normal(k_pe, (T, H), jnp.float32),
        "ln_gamma": jnp.ones((H,), jnp.float32),
        "ln_beta": jnp.zeros((H,), jnp.float32),
    }

    input_ids = jax.random.randint(k_ids, (B, T), 0, V, dtype=jnp.int32)
    segment_ids = jnp.zeros((B, T), jnp.int32)
    input_mask = jnp.ones((B, T), jnp.int32)

    score, path, feats = bert_crf_ner_forward(
        params, input_ids, segment_ids, input_mask, L, start_label_id)
    jax.block_until_ready((score, path, feats))

    # ---- validation against plain-JAX / numpy references ----
    seq_tm = synthetic_bert_encoder(params, input_ids, segment_ids, input_mask)  # (T, B, H)
    # reference projection at the kernel's operand precision (bf16 in, f32 accumulate)
    x_bf = np.asarray(seq_tm.astype(jnp.bfloat16).astype(jnp.float32))
    W_bf = np.asarray(W.astype(jnp.bfloat16).astype(jnp.float32))                 # (L, H)
    ref_feats = np.einsum('tbh,lh->btl', x_bf, W_bf) + np.asarray(b)              # (B, T, L)
    assert np.allclose(np.asarray(feats), ref_feats, atol=5e-3, rtol=1e-3), \
        "projection mismatch"

    ref_score, ref_path = reference_viterbi(np.asarray(feats), np.asarray(transitions),
                                            start_label_id)
    assert np.allclose(np.asarray(score), ref_score, atol=1e-3), "viterbi score mismatch"
    assert np.array_equal(np.asarray(path, np.int64), ref_path), "viterbi path mismatch"

    print("KERNEL_OK")
</pallas_src>

<mosaic_0001>
module attributes {stable_mosaic.version = 11 : i64} {
  func.func @_hidden2label_kernel(%arg0: i32, %arg1: memref<64x768xbf16, #tpu.memory_space<vmem>>, %arg2: memref<768x16xbf16, #tpu.memory_space<vmem>>, %arg3: memref<1x16xf32, #tpu.memory_space<vmem>>, %arg4: memref<64x16xf32, #tpu.memory_space<vmem>>) attributes {dimension_semantics = [#tpu.dimension_semantics<parallel>], iteration_bounds = array<i64: 1>, scalar_prefetch = 0 : i64, scratch_operands = 0 : i64, tpu.core_type = #tpu.core_type<tc>, window_params = [{transform_indices = @transform_0, window_bounds = array<i64: 64, 768>}, {pipeline_mode = #tpu.pipeline_mode<synchronous>, transform_indices = @transform_1, window_bounds = array<i64: 768, 16>}, {pipeline_mode = #tpu.pipeline_mode<synchronous>, transform_indices = @transform_2, window_bounds = array<i64: 1, 16>}, {transform_indices = @transform_3, window_bounds = array<i64: 64, 16>}]} {
    %c0 = arith.constant 0 : index
    %c0_0 = arith.constant 0 : index
    %0 = vector.load %arg1[%c0, %c0_0] : memref<64x768xbf16, #tpu.memory_space<vmem>>, vector<64x768xbf16>
    %c0_1 = arith.constant 0 : index
    %c0_2 = arith.constant 0 : index
    %1 = vector.load %arg2[%c0_1, %c0_2] : memref<768x16xbf16, #tpu.memory_space<vmem>>, vector<768x16xbf16>
    %cst = arith.constant dense<0.000000e+00> : vector<64x16xf32>
    %2 = tpu.matmul %0, %1, %cst {dimension_numbers = #tpu.dot_dimension_numbers<[1], [0], [0], [1], [0, 0, 1, 1], [], []>} : vector<64x768xbf16>, vector<768x16xbf16>, vector<64x16xf32> -> vector<64x16xf32>
    %c0_3 = arith.constant 0 : index
    %c0_4 = arith.constant 0 : index
    %3 = vector.load %arg3[%c0_3, %c0_4] : memref<1x16xf32, #tpu.memory_space<vmem>>, vector<1x16xf32>
    %4 = vector.broadcast %3 : vector<1x16xf32> to vector<64x16xf32>
    %5 = arith.addf %2, %4 : vector<64x16xf32>
    %c0_5 = arith.constant 0 : index
    %c0_6 = arith.constant 0 : index
    %6 = vector.load %arg4[%c0_5, %c0_6] : memref<64x16xf32, #tpu.memory_space<vmem>>, vector<64x16xf32>
    tpu.vector_store %arg4[%c0_5, %c0_6], %5 {strides = array<i32>} : memref<64x16xf32, #tpu.memory_space<vmem>>, vector<64x16xf32>,
    return
  }
  func.func @transform_0(%arg0: i32) -> (i32, i32) {
    %c0_i32 = arith.constant 0 : i32
    %c0_i32_0 = arith.constant 0 : i32
    return %arg0, %c0_i32 : i32, i32
  }
  func.func @transform_1(%arg0: i32) -> (i32, i32) {
    %c0_i32 = arith.constant 0 : i32
    %c0_i32_0 = arith.constant 0 : i32
    %c0_i32_1 = arith.constant 0 : i32
    return %c0_i32, %c0_i32_0 : i32, i32
  }
  func.func @transform_2(%arg0: i32) -> (i32, i32) {
    %c0_i32 = arith.constant 0 : i32
    %c0_i32_0 = arith.constant 0 : i32
    %c0_i32_1 = arith.constant 0 : i32
    return %c0_i32, %c0_i32_0 : i32, i32
  }
  func.func @transform_3(%arg0: i32) -> (i32, i32) {
    %c0_i32 = arith.constant 0 : i32
    %c0_i32_0 = arith.constant 0 : i32
    return %arg0, %c0_i32 : i32, i32
  }
}

</mosaic_0001>

<bundles_post_ra>
// kernel: tpu_custom_call.1
= control target key start
LH: loop header
LB: loop body
LE: loop exit
PB: predicated region body
PF: predicated region fallthrough
CT: control target
= control target key end

     0   :  { %vm745_vm0 = vcmask 130048   ;;  %s1331_s1 = inlined_call_operand.vmem [shape: bf16[768,16], index: 1, kind: input, shape index: {}]   ;;  %s1332_s0 = inlined_call_operand.vmem [shape: bf16[64,768], index: 0, kind: input, shape index: {}]   ;;  %s1333_s2 = inlined_call_operand.vmem [shape: f32[1,16], index: 2, kind: input, shape index: {}]   ;;  %s1334_s3 = inlined_call_operand.vmem [shape: f32[64,16], index: 3, kind: output, shape index: {}]  }
   0x1   :  { %v967_v0 = vld [vmem:[%s1331_s1 + $0x40] sm:$0xff]   ;;  %v971_v4 = vld [vmem:[%s1331_s1 + $0x48] sm:$0xff]   ;;  %v975_v8 = vld [vmem:[%s1331_s1 + $0x50] sm:$0xff]  }
   0x2   :  { %v968_v1 = vld [vmem:[%s1331_s1 + $0xc0] sm:$0xff]   ;;  %831 = vmatprep.subr.bf16.mxu0 %v967_v0  ;;  %v972_v5 = vld [vmem:[%s1331_s1 + $0xc8] sm:$0xff]   ;;  %v976_v9 = vld [vmem:[%s1331_s1 + $0xd0] sm:$0xff]  }
   0x3   :  { %v969_v2 = vld [vmem:[%s1331_s1] sm:$0xff]   ;;  %871 = vmatprep.subr.bf16.mxu1 %v968_v1  ;;  %v973_v6 = vld [vmem:[%s1331_s1 + $0x8] sm:$0xff]   ;;  %v977_v10 = vld [vmem:[%s1331_s1 + $0x10] sm:$0xff]  }
   0x4   :  { %v970_v3 = vld [vmem:[%s1331_s1 + $0x80] sm:$0xff]   ;;  %832 = vmatpush3.bf16.msra.mxu0 %v969_v2  ;;  %v974_v7 = vld [vmem:[%s1331_s1 + $0x88] sm:$0xff]   ;;  %v978_v11 = vld [vmem:[%s1331_s1 + $0x90] sm:$0xff]  }
   0x5   :  { %872 = vmatpush3.bf16.msra.mxu1 %v970_v3  ;;  %833 = vmatprep.subr.bf16.mxu0 %v971_v4  ;;  %v979_v12 = vld [vmem:[%s1331_s1 + $0x58] sm:$0xff]   ;;  %v983_v16 = vld [vmem:[%s1331_s1 + $0x60] sm:$0xff]   ;;  %v987_v20 = vld [vmem:[%s1331_s1 + $0x68] sm:$0xff]  }
   0x6   :  { %873 = vmatprep.subr.bf16.mxu1 %v972_v5  ;;  %v980_v13 = vld [vmem:[%s1331_s1 + $0xd8] sm:$0xff]   ;;  %v984_v17 = vld [vmem:[%s1331_s1 + $0xe0] sm:$0xff]   ;;  %v988_v21 = vld [vmem:[%s1331_s1 + $0xe8] sm:$0xff]  }
   0x7   :  { %v981_v14 = vld [vmem:[%s1331_s1 + $0x18] sm:$0xff]   ;;  %v985_v18 = vld [vmem:[%s1331_s1 + $0x20] sm:$0xff]   ;;  %v989_v22 = vld [vmem:[%s1331_s1 + $0x28] sm:$0xff]  }
   0x8   :  { %834 = vmatpush3.bf16.msra.mxu0 %v973_v6  ;;  %v982_v15 = vld [vmem:[%s1331_s1 + $0x98] sm:$0xff]   ;;  %v986_v19 = vld [vmem:[%s1331_s1 + $0xa0] sm:$0xff]   ;;  %v990_v23 = vld [vmem:[%s1331_s1 + $0xa8] sm:$0xff]  }
   0x9   :  { %874 = vmatpush3.bf16.msra.mxu1 %v974_v7  ;;  %835 = vmatprep.subr.bf16.mxu0 %v975_v8  ;;  %v991_v24 = vld [vmem:[%s1331_s1 + $0x70] sm:$0xff]   ;;  %v995_v28 = vld [vmem:[%s1331_s1 + $0x78] sm:$0xff]   ;;  %v1002_v34 = vld [vmem:[%s1332_s0 + $0x8] ss:$24 sps:$4 sm:$0xff]  }
   0xa   :  { %875 = vmatprep.subr.bf16.mxu1 %v976_v9  ;;  %v992_v25 = vld [vmem:[%s1331_s1 + $0xf0] sm:$0xff]   ;;  %v996_v29 = vld [vmem:[%s1331_s1 + $0xf8] sm:$0xff]   ;;  %v1004_v35 = vld [vmem:[%s1332_s0 + $0xc] ss:$24 sps:$4 sm:$0xff]  }
   0xb   :  { %v993_v26 = vld [vmem:[%s1331_s1 + $0x30] sm:$0xff]   ;;  %v997_v30 = vld [vmem:[%s1331_s1 + $0x38] sm:$0xff]   ;;  %v1005_v36 = vld [vmem:[%s1331_s1 + $0x140] sm:$0xff]   ;;  %647 = vmatprep.mubr.bf16.mxu1 %v1004_v35 }
   0xc   :  { %836 = vmatpush3.bf16.msra.mxu0 %v977_v10  ;;  %v994_v27 = vld [vmem:[%s1331_s1 + $0xb0] sm:$0xff]   ;;  %v998_v31 = vld [vmem:[%s1331_s1 + $0xb8] sm:$0xff]   ;;  %v1006_v37 = vld [vmem:[%s1331_s1 + $0x100] sm:$0xff]  }
   0xd   :  { %876 = vmatpush3.bf16.msra.mxu1 %v978_v11  ;;  %837 = vmatprep.subr.bf16.mxu0 %v979_v12  ;;  %v999_v32 = vld [vmem:[%s1332_s0] ss:$24 sps:$4 sm:$0xff]   ;;  %v1001_v33 = vld [vmem:[%s1332_s0 + $0x4] ss:$24 sps:$4 sm:$0xff]   ;;  %v1007_v38 = vld [vmem:[%s1331_s1 + $0x148] sm:$0xff]  }
   0xe   :  { %877 = vmatprep.subr.bf16.mxu1 %v980_v13  ;;  %582 = vmatprep.mubr.bf16.mxu0 %v1001_v33  ;;  %v1008_v39 = vld [vmem:[%s1331_s1 + $0x108] sm:$0xff]   ;;  %v1011_v41 = vld [vmem:[%s1332_s0 + $0x3c] ss:$24 sps:$4 sm:$0xff]   ;;  %v1014_v43 = vld [vmem:[%s1332_s0 + $0x38] ss:$24 sps:$4 sm:$0xff]  }
   0xf   :  { %v1009_v40 = vld [vmem:[%s1332_s0 + $0x34] ss:$24 sps:$4 sm:$0xff]   ;;  %v1013_v42 = vld [vmem:[%s1332_s0 + $0x30] ss:$24 sps:$4 sm:$0xff]   ;;  %v1017_v46 = vld [vmem:[%s1331_s1 + $0x158] sm:$0xff]  }
  0x10   :  { %838 = vmatpush3.bf16.msra.mxu0 %v981_v14  ;;  %v1015_v44 = vld [vmem:[%s1331_s1 + $0x150] sm:$0xff]   ;;  %v1018_v47 = vld [vmem:[%s1331_s1 + $0x118] sm:$0xff]   ;;  %v1021_v49 = vld [vmem:[%s1332_s0 + $0x6c] ss:$24 sps:$4 sm:$0xff]  }
  0x11   :  { %878 = vmatpush3.bf16.msra.mxu1 %v982_v15  ;;  %839 = vmatprep.subr.bf16.mxu0 %v983_v16  ;;  %v1016_v45 = vld [vmem:[%s1331_s1 + $0x110] sm:$0xff]   ;;  %v1019_v48 = vld [vmem:[%s1332_s0 + $0x64] ss:$24 sps:$4 sm:$0xff]   ;;  %v1023_v50 = vld [vmem:[%s1332_s0 + $0x60] ss:$24 sps:$4 sm:$0xff]  }
  0x12   :  { %879 = vmatprep.subr.bf16.mxu1 %v984_v17  ;;  %v1025_v51 = vld [vmem:[%s1331_s1 + $0x160] sm:$0xff]   ;;  %v1027_v54 = vld [vmem:[%s1331_s1 + $0x168] sm:$0xff]   ;;  %v1031_v56 = vld [vmem:[%s1332_s0 + $0x9c] ss:$24 sps:$4 sm:$0xff]  }
  0x13   :  { %v1024_v52 = vld [vmem:[%s1332_s0 + $0x68] ss:$24 sps:$4 sm:$0xff]   ;;  %v1029_v55 = vld [vmem:[%s1332_s0 + $0x94] ss:$24 sps:$4 sm:$0xff]   ;;  %v1034_v60 = vld [vmem:[%s1332_s0 + $0x98] ss:$24 sps:$4 sm:$0xff]  }
  0x14   :  { %840 = vmatpush3.bf16.msra.mxu0 %v985_v18  ;;  %v1026_v53 = vld [vmem:[%s1331_s1 + $0x120] sm:$0xff]   ;;  %v1028_v57 = vld [vmem:[%s1331_s1 + $0x128] sm:$0xff]   ;;  %v1035_v58 = vld [vmem:[%s1331_s1 + $0x170] sm:$0xff]  }
  0x15   :  { %880 = vmatpush3.bf16.msra.mxu1 %v986_v19  ;;  %841 = vmatprep.subr.bf16.mxu0 %v987_v20  ;;  %v1033_v59 = vld [vmem:[%s1332_s0 + $0x90] ss:$24 sps:$4 sm:$0xff]   ;;  %v1037_v62 = vld [vmem:[%s1331_s1 + $0x178] sm:$0xff]   ;;  %v1041_v63 = vld [vmem:[%s1332_s0 + $0x14] ss:$24 sps:$4 sm:$0xff]  }
  0x16   :  { %881 = vmatprep.subr.bf16.mxu1 %v988_v21  ;;  %v1036_v61 = vld [vmem:[%s1331_s1 + $0x130] sm:$0xff]   ;;  %v1038_v1 = vld [vmem:[%s1331_s1 + $0x138] sm:$0xff]   ;;  %v758_v10 = vld [vmem:[%s1333_s2] ss:$0 sm:$0xff] }
  0x17   :  { %v1044_v0 = vld [vmem:[%s1332_s0 + $0x74] ss:$24 sps:$4 sm:$0xff]   ;;  %v1039_v2 = vld [vmem:[%s1332_s0 + $0x10] ss:$24 sps:$4 sm:$0xff]   ;;  %v1045_v4 = vld [vmem:[%s1332_s0 + $0x44] ss:$24 sps:$4 sm:$0xff]  }
  0x18   :  { %842 = vmatpush3.bf16.msra.mxu0 %v989_v22  ;;  %v1042_v3 = vld [vmem:[%s1332_s0 + $0x70] ss:$24 sps:$4 sm:$0xff]   ;;  %v1047_v5 = vld [vmem:[%s1332_s0 + $0xa4] ss:$24 sps:$4 sm:$0xff]   ;;  %v1049_v6 = vld [vmem:[%s1332_s0 + $0x40] ss:$24 sps:$4 sm:$0xff]  }
  0x19   :  { %882 = vmatpush3.bf16.msra.mxu1 %v990_v23  ;;  %843 = vmatprep.subr.bf16.mxu0 %v991_v24  ;;  %v1050_v7 = vld [vmem:[%s1332_s0 + $0xa0] ss:$24 sps:$4 sm:$0xff]  }
  0x1a   :  { %883 = vmatprep.subr.bf16.mxu1 %v992_v25 }
  0x1c   :  { %844 = vmatpush3.bf16.msra.mxu0 %v993_v26 }
  0x1d   :  { %884 = vmatpush3.bf16.msra.mxu1 %v994_v27  ;;  %845 = vmatprep.subr.bf16.mxu0 %v995_v28 }
  0x1e   :  { %885 = vmatprep.subr.bf16.mxu1 %v996_v29 }
  0x20   :  { %846 = vmatpush3.bf16.msra.mxu0 %v997_v30 }
  0x21   :  { %886 = vmatpush3.bf16.msra.mxu1 %v998_v31  ;;  %911 = vmatprep.subr.bf16.mxu0 %v1005_v36 }
  0x22   :  { %951 = vmatprep.subr.bf16.mxu1 %v1005_v36 }
  0x23   :  { %583 = vmatmul.mubr.bf16.vlgmr.msra.gmra.mrb[0].mxu0 %v999_v32 }
  0x24   :  { %648 = vmatmul.mubr.bf16.vlgmr.msra.gmra.mrb[0].mxu1 %v1002_v34  ;;  %912 = vmatpush3.bf16.msra.mxu0 %v1006_v37 }
  0x25   :  { %959 = vmatpush3.bf16.msra.mxu1 %v1006_v37  ;;  %913 = vmatprep.subr.bf16.mxu0 %v1007_v38 }
  0x26   :  { %952 = vmatprep.subr.bf16.mxu1 %v1007_v38  ;;  %590 = vmatprep.mubr.bf16.mxu0 %v1009_v40 }
  0x27   :  { %655 = vmatprep.mubr.bf16.mxu1 %v1011_v41 }
  0x28   :  { %914 = vmatpush3.bf16.msra.mxu0 %v1008_v39 }
  0x29   :  { %960 = vmatpush3.bf16.msra.mxu1 %v1008_v39  ;;  %915 = vmatprep.subr.bf16.mxu0 %v1015_v44 }
  0x2a   :  { %953 = vmatprep.subr.bf16.mxu1 %v1015_v44 }
  0x2b   :  { %591 = vmatmul.mubr.bf16.gmra.mrb[4].mxu0 %v1013_v42 }
  0x2c   :  { %656 = vmatmul.mubr.bf16.gmra.mrb[4].mxu1 %v1014_v43  ;;  %916 = vmatpush3.bf16.msra.mxu0 %v1016_v45 }
  0x2d   :  { %961 = vmatpush3.bf16.msra.mxu1 %v1016_v45  ;;  %917 = vmatprep.subr.bf16.mxu0 %v1017_v46 }
  0x2e   :  { %954 = vmatprep.subr.bf16.mxu1 %v1017_v46  ;;  %598 = vmatprep.mubr.bf16.mxu0 %v1019_v48 }
  0x2f   :  { %663 = vmatprep.mubr.bf16.mxu1 %v1021_v49 }
  0x30   :  { %918 = vmatpush3.bf16.msra.mxu0 %v1018_v47 }
  0x31   :  { %962 = vmatpush3.bf16.msra.mxu1 %v1018_v47  ;;  %919 = vmatprep.subr.bf16.mxu0 %v1025_v51 }
  0x32   :  { %955 = vmatprep.subr.bf16.mxu1 %v1025_v51 }
  0x33   :  { %599 = vmatmul.mubr.bf16.gmra.mrb[8].mxu0 %v1023_v50 }
  0x34   :  { %664 = vmatmul.mubr.bf16.gmra.mrb[8].mxu1 %v1024_v52  ;;  %920 = vmatpush3.bf16.msra.mxu0 %v1026_v53 }
  0x35   :  { %606 = vmatprep.mubr.bf16.mxu0 %v1029_v55  ;;  %963 = vmatpush3.bf16.msra.mxu1 %v1026_v53 }
  0x36   :  { %921 = vmatprep.subr.bf16.mxu0 %v1027_v54  ;;  %956 = vmatprep.subr.bf16.mxu1 %v1027_v54 }
  0x37   :  { %671 = vmatprep.mubr.bf16.mxu1 %v1031_v56 }
  0x38   :  { %922 = vmatpush3.bf16.msra.mxu0 %v1028_v57 }
  0x39   :  { %964 = vmatpush3.bf16.msra.mxu1 %v1028_v57  ;;  %923 = vmatprep.subr.bf16.mxu0 %v1035_v58 }
  0x3a   :  { %957 = vmatprep.subr.bf16.mxu1 %v1035_v58 }
  0x3b   :  { %607 = vmatmul.mubr.bf16.gmra.mrb[12].mxu0 %v1033_v59 }
  0x3c   :  { %672 = vmatmul.mubr.bf16.gmra.mrb[12].mxu1 %v1034_v60  ;;  %712 = vmatprep.mubr.bf16.mxu0 %v1041_v63 }
  0x3d   :  { %924 = vmatpush3.bf16.msra.mxu0 %v1036_v61  ;;  %965 = vmatpush3.bf16.msra.mxu1 %v1036_v61 }
  0x3e   :  { %925 = vmatprep.subr.bf16.mxu0 %v1037_v62  ;;  %958 = vmatprep.subr.bf16.mxu1 %v1037_v62 }
  0x3f   :  { %728 = vmatprep.mubr.bf16.mxu1 %v1044_v0 }
  0x41   :  { %926 = vmatpush3.bf16.msra.mxu0 %v1038_v1  ;;  %966 = vmatpush3.bf16.msra.mxu1 %v1038_v1 }
  0x44   :  { %713 = vmatmul.mubr.bf16.vlgmr.msra.gmra.mrb[16].mxu0 %v1039_v2  ;;  %729 = vmatmul.mubr.bf16.vlgmr.msra.gmra.mrb[16].mxu1 %v1042_v3 }
  0x45   :  { %720 = vmatprep.mubr.bf16.mxu0 %v1045_v4  ;;  %736 = vmatprep.mubr.bf16.mxu1 %v1047_v5 }
  0x4c   :  { %721 = vmatmul.mubr.bf16.gmra.mrb[20].mxu0 %v1049_v6  ;;  %737 = vmatmul.mubr.bf16.gmra.mrb[20].mxu1 %v1050_v7 }
  0xf6   :  { %v847_v8 = vpop.f32.mrb[0].mxu0 }
  0xf7   :  { %v887_v9 = vpop.f32.mrb[0].mxu1  ;;  %v848_v11 = vpop.f32.mrb[1].mxu0 }
  0xf8   :  { %v849_v12 = vadd.f32 %v848_v11, %v847_v8  ;;  %v888_v13 = vpop.f32.mrb[1].mxu1  ;;  %v850_v14 = vpop.f32.mrb[2].mxu0 }
  0xf9   :  { %v889_v15 = vadd.f32 %v888_v13, %v887_v9  ;;  %v890_v16 = vpop.f32.mrb[2].mxu1  ;;  %v851_v17 = vpop.f32.mrb[3].mxu0 }
  0xfa   :  { %v585_v18 = vadd.f32 %v849_v12, %v758_v10  ;;  %v852_v19 = vadd.f32 %v851_v17, %v850_v14  ;;  %v891_v20 = vpop.f32.mrb[3].mxu1 }
  0xfb   :  { %v892_v21 = vadd.f32 %v891_v20, %v890_v16 }
  0xfc   :  { %v650_v22 = vadd.f32 %v889_v15, %v585_v18  ;;  %v588_v23 = vadd.f32 %v852_v19, %v758_v10 }
  0xfe   :  { %v1290_v24 = vadd.f32 %v892_v21, %v588_v23  ;;  %v853_v25 = vpop.f32.mrb[4].mxu0 }
  0xff   :  { %v893_v26 = vpop.f32.mrb[4].mxu1  ;;  %v854_v27 = vpop.f32.mrb[5].mxu0 }
 0x100   :  { %v855_v28 = vadd.f32 %v854_v27, %v853_v25  ;;  %v894_v29 = vpop.f32.mrb[5].mxu1  ;;  %v856_v30 = vpop.f32.mrb[6].mxu0 }
 0x101   :  { %v895_v31 = vadd.f32 %v894_v29, %v893_v26  ;;  %v896_v32 = vpop.f32.mrb[6].mxu1  ;;  %v857_v33 = vpop.f32.mrb[7].mxu0 }
 0x102   :  { %v593_v34 = vadd.f32 %v855_v28, %v758_v10  ;;  %v858_v35 = vadd.f32 %v857_v33, %v856_v30  ;;  %v897_v36 = vpop.f32.mrb[7].mxu1 }
 0x103   :  { %v898_v37 = vadd.f32 %v897_v36, %v896_v32 }
 0x104   :  { %v1292_v38 = vadd.f32 %v895_v31, %v593_v34  ;;  %v596_v39 = vadd.f32 %v858_v35, %v758_v10 }
 0x106   :  { %v1294_v40 = vadd.f32 %v898_v37, %v596_v39  ;;  %v859_v41 = vpop.f32.mrb[8].mxu0 }
 0x107   :  { %v899_v42 = vpop.f32.mrb[8].mxu1  ;;  %v860_v43 = vpop.f32.mrb[9].mxu0 }
 0x108   :  { %v861_v44 = vadd.f32 %v860_v43, %v859_v41  ;;  %v900_v45 = vpop.f32.mrb[9].mxu1  ;;  %v862_v46 = vpop.f32.mrb[10].mxu0 }
 0x109   :  { %v901_v47 = vadd.f32 %v900_v45, %v899_v42  ;;  %v902_v48 = vpop.f32.mrb[10].mxu1  ;;  %v863_v49 = vpop.f32.mrb[11].mxu0 }
 0x10a   :  { %v601_v50 = vadd.f32 %v861_v44, %v758_v10  ;;  %v864_v51 = vadd.f32 %v863_v49, %v862_v46  ;;  %v903_v52 = vpop.f32.mrb[11].mxu1 }
 0x10b   :  { %v904_v53 = vadd.f32 %v903_v52, %v902_v48 }
 0x10c   :  { %v666_v54 = vadd.f32 %v901_v47, %v601_v50  ;;  %v604_v55 = vadd.f32 %v864_v51, %v758_v10 }
 0x10e   :  { %v669_v56 = vadd.f32 %v904_v53, %v604_v55  ;;  %v865_v57 = vpop.f32.mrb[12].mxu0 }
 0x10f   :  { %v905_v58 = vpop.f32.mrb[12].mxu1  ;;  %v866_v59 = vpop.f32.mrb[13].mxu0 }
 0x110   :  { %v867_v60 = vadd.f32 %v866_v59, %v865_v57  ;;  %v906_v61 = vpop.f32.mrb[13].mxu1  ;;  %v868_v62 = vpop.f32.mrb[14].mxu0 }
 0x111   :  { %v907_v63 = vadd.f32 %v906_v61, %v905_v58  ;;  %v908_v0 = vpop.f32.mrb[14].mxu1  ;;  %v869_v1 = vpop.f32.mrb[15].mxu0 }
 0x112   :  { %v609_v2 = vadd.f32 %v867_v60, %v758_v10  ;;  %v870_v3 = vadd.f32 %v869_v1, %v868_v62  ;;  %v909_v4 = vpop.f32.mrb[15].mxu1 }
 0x113   :  { %v910_v5 = vadd.f32 %v909_v4, %v908_v0 }
 0x114   :  { %v674_v6 = vadd.f32 %v907_v63, %v609_v2  ;;  %v612_v7 = vadd.f32 %v870_v3, %v758_v10 }
 0x116   :  { %v677_v8 = vadd.f32 %v910_v5, %v612_v7 }
 0x117   :  { %v927_v9 = vpop.f32.mrb[16].mxu0  ;;  %v939_v11 = vpop.f32.mrb[16].mxu1 }
 0x118   :  { %v928_v12 = vpop.f32.mrb[17].mxu0  ;;  %v940_v14 = vpop.f32.mrb[17].mxu1 }
 0x119   :  { %v929_v13 = vadd.f32 %v928_v12, %v927_v9  ;;  %v930_v15 = vpop.f32.mrb[18].mxu0  ;;  %v941_v16 = vadd.f32 %v940_v14, %v939_v11  ;;  %v942_v17 = vpop.f32.mrb[18].mxu1 }
 0x11a   :  { %v931_v18 = vpop.f32.mrb[19].mxu0  ;;  %v943_v21 = vpop.f32.mrb[19].mxu1 }
 0x11b   :  { %v715_v19 = vadd.f32 %v929_v13, %v650_v22  ;;  %v932_v20 = vadd.f32 %v931_v18, %v930_v15  ;;  %v731_v23 = vadd.f32 %v941_v16, %v666_v54  ;;  %v944_v25 = vadd.f32 %v943_v21, %v942_v17 }
 0x11d   :  { %746 = vst.msk [vmem:[%s1334_s3] sm:$0xff] %vm745_vm0, %v715_v19  ;;  %v718_v10 = vadd.f32 %v932_v20, %v1290_v24  ;;  %750 = vst.msk [vmem:[%s1334_s3 + $0x20] sm:$0xff] %vm745_vm0, %v731_v23  ;;  %v734_v26 = vadd.f32 %v944_v25, %v669_v56 }
 0x11f   :  { %747 = vst.msk [vmem:[%s1334_s3 + $0x8] sm:$0xff] %vm745_vm0, %v718_v10  ;;  %v933_v22 = vpop.f32.mrb[20].mxu0  ;;  %751 = vst.msk [vmem:[%s1334_s3 + $0x28] sm:$0xff] %vm745_vm0, %v734_v26  ;;  %v945_v27 = vpop.f32.mrb[20].mxu1 }
 0x120   :  { %v934_v28 = vpop.f32.mrb[21].mxu0  ;;  %v946_v29 = vpop.f32.mrb[21].mxu1 }
 0x121   :  { %v935_v24 = vadd.f32 %v934_v28, %v933_v22  ;;  %v936_v30 = vpop.f32.mrb[22].mxu0  ;;  %v947_v31 = vadd.f32 %v946_v29, %v945_v27  ;;  %v948_v32 = vpop.f32.mrb[22].mxu1 }
 0x122   :  { %v937_v33 = vpop.f32.mrb[23].mxu0  ;;  %v949_v36 = vpop.f32.mrb[23].mxu1 }
 0x123   :  { %v723_v34 = vadd.f32 %v935_v24, %v1292_v38  ;;  %v938_v35 = vadd.f32 %v937_v33, %v936_v30  ;;  %v739_v37 = vadd.f32 %v947_v31, %v674_v6  ;;  %v950_v39 = vadd.f32 %v949_v36, %v948_v32 }
 0x125   :  { %748 = vst.msk [vmem:[%s1334_s3 + $0x10] sm:$0xff] %vm745_vm0, %v723_v34  ;;  %v726_v41 = vadd.f32 %v938_v35, %v1294_v40  ;;  %752 = vst.msk [vmem:[%s1334_s3 + $0x30] sm:$0xff] %vm745_vm0, %v739_v37  ;;  %v742_v42 = vadd.f32 %v950_v39, %v677_v8 }
 0x127   :  { %749 = vst.msk [vmem:[%s1334_s3 + $0x18] sm:$0xff] %vm745_vm0, %v726_v41  ;;  %753 = vst.msk [vmem:[%s1334_s3 + $0x38] sm:$0xff] %vm745_vm0, %v742_v42 }

</bundles_post_ra>
